<compile_context>
chip_gen: v5e
topology: v5e:2x2
jax: 0.10.0
libtpu: 0.0.40
codegen_flags: <defaults>
</compile_context>

<pallas_src>
import math

import jax
import jax.numpy as jnp
from jax import lax
from jax.experimental import pallas as pl
from jax.experimental.pallas import tpu as pltpu


def make_pe_buffer(d_model: int, max_len: int = 5000, dtype=jnp.float32):
    """Sinusoidal positional-encoding buffer, shape (1, max_len, d_model)."""
    position = jnp.arange(0.0, max_len, dtype=jnp.float32)[:, None]          # (L, 1)
    div_term = jnp.exp(
        jnp.arange(0.0, d_model, 2, dtype=jnp.float32)
        * -(math.log(10000.0) / d_model)
    )                                                                         # (D/2,)
    angles = position * div_term                                              # (L, D/2)
    pe = jnp.zeros((max_len, d_model), dtype=jnp.float32)
    pe = pe.at[:, 0::2].set(jnp.sin(angles))
    pe = pe.at[:, 1::2].set(jnp.cos(angles))
    return pe[None].astype(dtype)                                             # (1, L, D)


def _pick_row_tile(S: int, D: int, itemsize: int, target_bytes: int = 2 << 20) -> int:
    """Largest multiple-of-8 divisor of S whose (rows, D) tile fits the byte budget."""
    max_rows = max(8, target_bytes // max(1, D * itemsize))
    divs = [t for t in range(8, S + 1, 8) if S % t == 0]
    fits = [t for t in divs if t <= max_rows]
    if fits:
        return max(fits)
    return min(divs)


def _pos_enc_kernel(seed_ref, x_ref, pe_ref, o_ref, *,
                    p: float, training: bool, row_tile: int, d_model: int,
                    n_s_tiles: int):
    # x_ref / pe_ref / o_ref: (row_tile, d_model) VMEM tiles.
    y = x_ref[...] + pe_ref[...]

    if training and p > 0.0:
        st = pl.program_id(0)
        b = pl.program_id(1)
        flat_block = b * n_s_tiles + st                      # unique block id
        row_base = flat_block * row_tile                     # global row of this tile

        shape = (row_tile, d_model)
        rows = lax.broadcasted_iota(jnp.int32, shape, 0) + row_base
        cols = lax.broadcasted_iota(jnp.int32, shape, 1)
        idx = rows * d_model + cols                          # global element id
        h = idx.astype(jnp.uint32)

        # Mix with the seed, then two rounds of murmur3-style finalization.
        seed_u = seed_ref[0].astype(jnp.uint32)
        h = h ^ (seed_u * jnp.uint32(0x9E3779B9) + jnp.uint32(0x7F4A7C15))
        h = h ^ (h >> 16)
        h = h * jnp.uint32(0x85EBCA6B)
        h = h ^ (h >> 13)
        h = h * jnp.uint32(0xC2B2AE35)
        h = h ^ (h >> 16)
        h = h ^ (h >> 15)
        h = h * jnp.uint32(0x2C1B3C6D)
        h = h ^ (h >> 12)
        h = h * jnp.uint32(0x297A2D39)
        h = h ^ (h >> 15)

        # Integer-domain keep test: keep iff uniform_u32 >= p * 2^32  (prob 1 - p).
        thr = jnp.uint32(min(0xFFFFFFFF, int(round(p * 4294967296.0))))
        keep = h >= thr
        scale = jnp.asarray(1.0 / (1.0 - p), dtype=y.dtype)
        y = jnp.where(keep, y * scale, jnp.zeros_like(y))

    o_ref[...] = y.astype(o_ref.dtype)


def positional_encoding(x, pe, *, p: float = 0.1, training: bool = True, seed: int = 0):
    """x: (B, S, D) float array.  pe: (1, max_len, D) buffer (max_len >= S)."""
    B, S, D = x.shape
    pe_slice = pe[0, :S, :].astype(x.dtype)                  # (S, D)
    x2 = x.reshape(B * S, D)                                 # lane axis = d_model
    seed_arr = jnp.array([seed], dtype=jnp.int32)
    itemsize = jnp.dtype(x.dtype).itemsize

    if S % 8 == 0:
        row_tile = _pick_row_tile(S, D, itemsize)
        n_s_tiles = S // row_tile
        grid = (n_s_tiles, B)                                # batch innermost -> pe reused
        pe_in = pe_slice                                     # (S, D)
        x_map = lambda st, b, seed: (b * n_s_tiles + st, 0)
        pe_map = lambda st, b, seed: (st, 0)
    else:
        # Fallback for seq lengths not divisible by 8: one full-array block.
        # TODO(synk): pad S to a multiple of 8 for large ragged sequence lengths.
        row_tile = B * S
        n_s_tiles = 1
        grid = (1, 1)
        pe_in = jnp.broadcast_to(pe_slice[None], (B, S, D)).reshape(B * S, D)
        x_map = lambda st, b, seed: (0, 0)
        pe_map = lambda st, b, seed: (0, 0)

    kernel = lambda seed_ref, x_ref, pe_ref, o_ref: _pos_enc_kernel(
        seed_ref, x_ref, pe_ref, o_ref,
        p=p, training=training, row_tile=row_tile, d_model=D, n_s_tiles=n_s_tiles,
    )

    out = pl.pallas_call(
        kernel,
        out_shape=jax.ShapeDtypeStruct((B * S, D), x.dtype),
        grid_spec=pltpu.PrefetchScalarGridSpec(
            num_scalar_prefetch=1,                            # seed -> SMEM
            grid=grid,
            in_specs=[
                pl.BlockSpec((row_tile, D), x_map),           # x row-tile
                pl.BlockSpec((row_tile, D), pe_map),          # pe (reused across batch)
            ],
            out_specs=pl.BlockSpec((row_tile, D), x_map),
        ),
        compiler_params=pltpu.CompilerParams(
            # Stateless per-element RNG -> safe to shard both axes across cores.
            dimension_semantics=("parallel", "parallel"),
        ),
    )(seed_arr, x2, pe_in)

    return out.reshape(B, S, D)


if __name__ == "__main__":
    # Small, module-consistent shapes: batch=2, seq=8, d_model=32.
    B, S, D = 2, 8, 32
    dropout_p = 0.1
    max_len = 64  # small max_len for the test buffer (module default is 5000)

    key = jax.random.PRNGKey(0)
    x = jax.random.normal(key, (B, S, D), dtype=jnp.float32)
    pe = make_pe_buffer(D, max_len=max_len)
    ref = x + pe[:, :S, :]

    # 1) Eval mode (dropout disabled): must match pure-JAX reference exactly.
    out_eval = jax.block_until_ready(
        positional_encoding(x, pe, p=dropout_p, training=False)
    )
    assert out_eval.shape == (B, S, D)
    assert jnp.allclose(out_eval, ref, atol=1e-6), "eval-mode mismatch"

    # 2) Training mode: inverted dropout with in-kernel stateless RNG.
    out_train = jax.block_until_ready(
        positional_encoding(x, pe, p=dropout_p, training=True, seed=1234)
    )
    assert out_train.shape == (B, S, D)
    scale = 1.0 / (1.0 - dropout_p)
    kept = out_train != 0
    # Kept elements are exactly (x + pe) / (1 - p); dropped elements are zero.
    assert jnp.allclose(
        jnp.where(kept, out_train, ref * scale), ref * scale, atol=1e-5
    ), "train-mode kept-element scaling mismatch"
    drop_frac = 1.0 - float(jnp.mean(kept.astype(jnp.float32)))
    assert 0.0 < drop_frac < 0.35, f"drop fraction {drop_frac} inconsistent with p={dropout_p}"

    # Reproducibility: same seed -> identical mask.
    out_train2 = jax.block_until_ready(
        positional_encoding(x, pe, p=dropout_p, training=True, seed=1234)
    )
    assert jnp.array_equal(out_train, out_train2), "dropout not reproducible for fixed seed"

    print("KERNEL_OK")
</pallas_src>

<mosaic_0001>
module attributes {stable_mosaic.version = 11 : i64} {
  func.func @_lambda_(%arg0: i32, %arg1: i32, %arg2: memref<1xi32, #tpu.memory_space<smem>>, %arg3: memref<8x32xf32, #tpu.memory_space<vmem>>, %arg4: memref<8x32xf32, #tpu.memory_space<vmem>>, %arg5: memref<8x32xf32, #tpu.memory_space<vmem>>) attributes {dimension_semantics = [#tpu.dimension_semantics<parallel>, #tpu.dimension_semantics<parallel>], iteration_bounds = array<i64: 1, 2>, scalar_prefetch = 1 : i64, scratch_operands = 0 : i64, tpu.core_type = #tpu.core_type<tc>, window_params = [{transform_indices = @transform_0, window_bounds = array<i64: 8, 32>}, {transform_indices = @transform_1, window_bounds = array<i64: 8, 32>}, {transform_indices = @transform_2, window_bounds = array<i64: 8, 32>}]} {
    %c0 = arith.constant 0 : index
    %c0_0 = arith.constant 0 : index
    %0 = vector.load %arg3[%c0, %c0_0] : memref<8x32xf32, #tpu.memory_space<vmem>>, vector<8x32xf32>
    %c0_1 = arith.constant 0 : index
    %c0_2 = arith.constant 0 : index
    %1 = vector.load %arg4[%c0_1, %c0_2] : memref<8x32xf32, #tpu.memory_space<vmem>>, vector<8x32xf32>
    %2 = arith.addf %0, %1 : vector<8x32xf32>
    %c0_3 = arith.constant 0 : index
    %c0_4 = arith.constant 0 : index
    %3 = vector.load %arg5[%c0_3, %c0_4] : memref<8x32xf32, #tpu.memory_space<vmem>>, vector<8x32xf32>
    tpu.vector_store %arg5[%c0_3, %c0_4], %2 {strides = array<i32>} : memref<8x32xf32, #tpu.memory_space<vmem>>, vector<8x32xf32>,
    return
  }
  func.func @transform_0(%arg0: i32, %arg1: i32, %arg2: memref<1xi32, #tpu.memory_space<smem>>) -> (i32, i32) {
    %c1_i32 = arith.constant 1 : i32
    %0 = arith.muli %arg1, %c1_i32 : i32
    %1 = arith.addi %0, %arg0 : i32
    %c0_i32 = arith.constant 0 : i32
    %c0_i32_0 = arith.constant 0 : i32
    return %1, %c0_i32 : i32, i32
  }
  func.func @transform_1(%arg0: i32, %arg1: i32, %arg2: memref<1xi32, #tpu.memory_space<smem>>) -> (i32, i32) {
    %c0_i32 = arith.constant 0 : i32
    %c0_i32_0 = arith.constant 0 : i32
    return %arg0, %c0_i32 : i32, i32
  }
  func.func @transform_2(%arg0: i32, %arg1: i32, %arg2: memref<1xi32, #tpu.memory_space<smem>>) -> (i32, i32) {
    %c1_i32 = arith.constant 1 : i32
    %0 = arith.muli %arg1, %c1_i32 : i32
    %1 = arith.addi %0, %arg0 : i32
    %c0_i32 = arith.constant 0 : i32
    %c0_i32_0 = arith.constant 0 : i32
    return %1, %c0_i32 : i32, i32
  }
}

</mosaic_0001>

<bundles_post_ra>
// kernel: tpu_custom_call.1
= control target key start
LH: loop header
LB: loop body
LE: loop exit
PB: predicated region body
PF: predicated region fallthrough
CT: control target
= control target key end

     0   :  { %9 = vsyncpa [#allocation5], 0  ;;  %s724_s0 = inlined_call_operand.<no memory space> [shape: s32[1], index: 0, kind: input, shape index: {}]   ;;  %s725_s1 = inlined_call_operand.hbm [shape: f32[16,32], index: 1, kind: input, shape index: {}]   ;;  %s726_s2 = inlined_call_operand.hbm [shape: f32[8,32], index: 2, kind: input, shape index: {}]   ;;  %s727_s3 = inlined_call_operand.hbm [shape: f32[16,32], index: 3, kind: output, shape index: {}]  }
   0x1   :  { %11 = vsyncpa [#allocation5 + $0x1], 0 }
   0x2   :  { %12 = vsyncpa [#allocation8], 0 }
   0x3   :  { %13 = vsyncpa [#allocation6], 0 }
   0x4   :  { %15 = vsyncpa [#allocation6 + $0x1], 0  ;;  %s575_s12 = smov 0   ;;  %s577_s13 = smov 0  }
   0x5   :  { %s579_s14 = smov 0   ;;  %s581_s0 = smov 0  }
   0x6   :  { %s583_s15 = smov 0   ;;  %s585_s16 = smov 0  }
   0x7 LB: > { %s318_s17 = sadd.s32 4294967295, %s552_s16   ;;  %s319_s18 = sadd.s32 4294967294, %s552_s16   ;;  %s552_s16 = sphi %s585_s16, %s21_s16   ;;  %s548_s15 = sphi %s583_s15, %s739_s15   ;;  %s544_s0 = sphi %s581_s0, %s738_s0   ;;  %s540_s14 = sphi %s579_s14, %s737_s14   ;;  %s536_s13 = sphi %s577_s13, %s736_s13   ;;  %s532_s12 = sphi %s575_s12, %s735_s12  }
   0x8   : > { %p55_p0 = scmp.ne.s32.totalorder %s536_s13, %s532_s12  ;;  %p609_p1 = scmp.eq.s32.totalorder %s318_s17, 0 }
   0x9   : > { %p613_p2 = scmp.eq.s32.totalorder %s318_s17, 1  ;;  %p113_p3 = scmp.eq.s32.totalorder %s319_s18, 1 }
   0xa   : > { %p619_p4 = por %p609_p1, %p55_p0  ;;  %p320_p5 = scmp.ge.s32.totalorder %s552_s16, 1 }
   0xb   : > { %p624_p6 = por %p113_p3, %p55_p0  ;;  %p120_p7 = scmp.lt.s32.totalorder %s552_s16, 3 }
   0xc   : > { %s134_s25 = sshll.u32 %s726_s2, 4  ;;  %p322_p9 = scmp.ge.s32.totalorder %s552_s16, 2  ;;  %s135_s25 = int_to_ptr.hbm [resolvable:$true] %s134_s25 }
   0xd   : > { %p632_p8 = pnand %p320_p5, %p120_p7  ;;  %s554_s27 = smov [#allocation7]  }
   0xe   : > { %s136_s28 = sshll.u32 %s554_s27, 4  ;;  %s30_s29 = sadd.s32 1, %s548_s15  ;;  %s137_s28 = int_to_ptr.vmem [resolvable:$true] %s136_s28 }
   0xf   : > { %p341_p10 = pneg %p632_p8  ;;  %p31_p12 = scmp.ge.s32.totalorder %s30_s29, 2 }
  0x10   : > { %s42_s30 = sadd.s32 1, %s540_s14  ;;  %p49_p13 = scmp.ne.s32.totalorder %s540_s14, %s536_s13 }
  0x11   : > { %p342_p11 = pnand %p341_p10, %p609_p1  ;;  %p50_p0 = scmp.eq.s32.totalorder %s552_s16, 0 }
  0x12   : > { %s741_s29 = smov (%p31_p12, %s30_s29), 0  ;;  %p654_p5 = por %p613_p2, %p49_p13 }
  0x13   : > { %344 = dma.hbm_to_vmem [thread:$0]  (!%p342_p11), %s135_s25, 128, %s137_s28, [#allocation8]  }
  0x14   : > { %p648_p3 = por %p50_p0, %p49_p13  ;;  %s39_s6 = ssub.s32 %s548_s15, %s741_s29 }
  0x15   : > { %p354_p7 = scmp.lt.s32.totalorder %s552_s16, 2  ;;  %p40_p10 = scmp.eq.s32.totalorder %s39_s6, 0 }
  0x16   : > { %s147_s7 = sand.u32 1, %s540_s14   ;;  %s324_s10 = sshll.u32 %s548_s15, 3 }
  0x17   : > { %s323_s8 = sshll.u32 %s147_s7, 3  ;;  %s156_s18 = scalar_lea.hbm %s725_s1, %s324_s10 }
  0x18   : > { %s663_s9 = scalar_select %p40_p10, %s540_s14, %s42_s30  }
  0x19   : > { %s151_s23 = scalar_lea.vmem [#allocation4], %s323_s8  ;;  %s158_s20 = sshll.u32 %s156_s18, 4  ;;  %s159_s20 = int_to_ptr.hbm [resolvable:$true] %s158_s20 }
  0x1a   : > { %s160_s24 = sshll.u32 %s151_s23, 4  ;;  %p346_p2 = pnand %p354_p7, %p648_p3  ;;  %s161_s24 = int_to_ptr.vmem [resolvable:$true] %s160_s24 }
  0x1b   : > { %s148_s25 = scalar_lea.sflag [#allocation5], %s147_s7  ;;  %169 = sbr.rel (%p632_p8) target bundleno = 50 (0x32), region = 28 }
  0x1c   : > { %348 = dma.hbm_to_vmem [thread:$0]  (!%p346_p2), %s159_s20, 128, %s161_s24, %s148_s25  }
  0x1d   : > { %s674_s27 = sand.u32 (!%p632_p8), 1, %s536_s13  }
  0x1e   : > { %s326_s28 = sshll.u32 (!%p632_p8), %s674_s27, 3  ;;  %s172_s30 = scalar_lea.sflag (!%p632_p8), [#allocation5], %s674_s27 }
  0x1f   : > { %s175_s6 = scalar_lea.vmem (!%p632_p8), [#allocation4], %s326_s28 }
  0x20   : > { %519 = dma.done.wait (%p619_p4), %s172_s30, 128  }
  0x21   : > { %521 = vsyncadd (%p619_p4), %s172_s30, 4294967168 }
  0x22   : > { %523 = dma.done.wait (%p609_p1), [#allocation8], 128  }
  0x23   : > { %525 = vsyncadd (%p609_p1), [#allocation8], 4294967168  ;;  %s330_s26 = sshll.u32 %s544_s0, 3  ;;  %s201_s10 = scalar_lea.vmem [#allocation9], %s326_s28  ;;  %v204_v0 = vld [vmem:[%s175_s6] sm:$0xff]  ;;  %v205_v1 = vld [vmem:[#allocation7] sm:$0xff] }
  0x24   : > { %s221_s8 = scalar_lea.hbm %s727_s3, %s330_s26  ;;  %s223_s11 = sshll.u32 %s201_s10, 4  ;;  %vm207_vm0 = vcmask 261120   ;;  %v206_v2 = vadd.f32 %v205_v1, %v204_v0  ;;  %s224_s11 = int_to_ptr.vmem [resolvable:$true] %s223_s11 }
  0x25   : > { %s225_s17 = sshll.u32 %s221_s8, 4  ;;  %s210_s19 = scalar_lea.sflag [#allocation6], %s674_s27  ;;  %s226_s17 = int_to_ptr.hbm [resolvable:$true] %s225_s17 }
  0x26   : > { %208 = vst.msk [vmem:[%s201_s10] sm:$0xff] %vm207_vm0, %v206_v2  ;;  %s480_s21 = sshra.s32 %s226_s17, 4  ;;  %s486_s24 = scalar_lea.hbm %s727_s3, 16  ;;  %s481_s21 = int_to_ptr.hbm [resolvable:$true] %s480_s21 }
  0x27   : > { %s482_s18 = scalar_lea.hbm %s481_s21, 8  ;;  %p487_p11 = scmp.lt.s32.totalorder %s481_s21, %s727_s3 }
  0x28   : > { %p483_p1 = scmp.ne.s32.totalorder %s481_s21, %s482_s18  ;;  %p488_p12 = scmp.lt.s32.totalorder %s486_s24, %s482_s18 }
  0x2a   : > { %p484_p4 = pnand %p483_p1, %p654_p5  ;;  %p489_p13 = por %p488_p12, %p487_p11 }
  0x2c   : > { %p485_p8 = pneg %p484_p4 }
  0x2e   : > { %p490_p0 = pnand %p489_p13, %p485_p8 }
  0x30   : > { %493 = shalt.err (!%p490_p0)
}
  0x31   : > { %339 = dma.vmem_to_hbm [thread:$0]  (%p654_p5), %s224_s11, 128, %s226_s17, %s210_s19  }
  0x32 PF: > { %s237_s27 = sand.u32 1, %s532_s12   ;;  %p350_p3 = pnand %p322_p9, %p624_p6 }
  0x33   : > { %s238_s28 = scalar_lea.sflag [#allocation6], %s237_s27 }
  0x34   : > { %p351_p7 = pneg %p350_p3 }
  0x36   : > { %527 = dma.done.wait (%p351_p7), %s238_s28, 128  }
  0x37   : > { %529 = vsyncadd (%p351_p7), %s238_s28, 4294967168  ;;  %s21_s16 = sadd.s32 1, %s552_s16   ;;  %s735_s12 = smov %s536_s13 }
  0x38   : > { %p18_p10 = scmp.ge.s32.totalorder %s21_s16, 4   ;;  %s736_s13 = smov %s540_s14 }
  0x39   : > { %s737_s14 = smov %s663_s9  ;;  %s738_s0 = smov %s548_s15 }
  0x3a   : > { %s739_s15 = smov %s741_s29  ;;  %20 = sbr.rel (!%p18_p10) target bundleno = 7 (0x7), region = 78 }
  0x3f   :  { %244 = vsyncpa [#allocation5], 1 }
  0x40   :  { %246 = vsyncpa [#allocation5 + $0x1], 1 }
  0x41   :  { %247 = vsyncpa [#allocation8], 1 }
  0x42   :  { %248 = vsyncpa [#allocation6], 1 }
  0x43   :  { %250 = vsyncpa [#allocation6 + $0x1], 1 }

</bundles_post_ra>
